<compile_context>
chip_gen: v7x
topology: tpu7x:2x2x1
jax: 0.10.0
libtpu: 0.0.40
codegen_flags: <defaults>
</compile_context>

<pallas_src>
import jax
import jax.numpy as jnp
from jax.experimental import pallas as pl
from jax.experimental.pallas import tpu as pltpu


def conv_bn_relu_kernel(x_ref, w_ref, b_ref, o_ref):
    """One row-tile per grid step.

    x_ref: (Kp, TM)    transposed im2col columns (bf16, VMEM)
    w_ref: (Cout, Kp)  BN-scale-folded weights (bf16)
    b_ref: (Cout, 1)   folded BN bias (f32)
    o_ref: (Cout, TM)  output tile (lane-dense, no channel padding)
    """
    acc = jnp.dot(w_ref[...], x_ref[...], preferred_element_type=jnp.float32)
    o_ref[...] = jnp.maximum(acc + b_ref[...], 0.0).astype(o_ref.dtype)


def _round_up(x, m):
    return ((x + m - 1) // m) * m


def basic_conv3d(x_ncdhw, weight_oidhw, gamma, beta, running_mean, running_var,
                 *, stride=1, padding=1, eps=1e-3, row_tile=2048,
                 compute_dtype=jnp.bfloat16):
    """Forward pass of BasicConv3d. Input/weight in PyTorch layouts (NCDHW / OIDHW)."""
    N, Cin, D, H, W = x_ncdhw.shape
    Cout, _, kD, kH, kW = weight_oidhw.shape

    # ---------------- plain-JAX glue: layout, padding, im2col, BN folding ----------------
    x = jnp.transpose(x_ncdhw, (0, 2, 3, 4, 1)).astype(jnp.float32)          # NDHWC
    x = jnp.pad(x, ((0, 0),
                    (padding, padding), (padding, padding), (padding, padding),
                    (0, 0)))
    Dp, Hp, Wp = D + 2 * padding, H + 2 * padding, W + 2 * padding
    Do = (Dp - kD) // stride + 1
    Ho = (Hp - kH) // stride + 1
    Wo = (Wp - kW) // stride + 1

    # im2col: (rows, K) with K ordered as (kd, kh, kw, cin)
    patches = []
    for kd in range(kD):
        for kh in range(kH):
            for kw in range(kW):
                patches.append(
                    x[:,
                      kd: kd + (Do - 1) * stride + 1: stride,
                      kh: kh + (Ho - 1) * stride + 1: stride,
                      kw: kw + (Wo - 1) * stride + 1: stride,
                      :])
    K = kD * kH * kW * Cin
    rows = N * Do * Ho * Wo
    im2col = jnp.concatenate(patches, axis=-1).reshape(rows, K)

    # Weights -> (Cout, K) with matching K order; fold BN scale into weights.
    w = jnp.transpose(weight_oidhw, (2, 3, 4, 1, 0)).reshape(K, Cout).astype(jnp.float32)
    scale = gamma / jnp.sqrt(running_var + eps)                               # (Cout,)
    bias = (beta - running_mean * scale).astype(jnp.float32).reshape(Cout, 1)
    w_t = (w * scale[None, :]).T                                              # (Cout, K)

    # Row tile: big enough to amortize per-step pipeline overhead, but keep >= 2
    # grid steps so the "parallel" axis can shard across v7x's two TensorCores.
    TM = max(128, _round_up(int(row_tile), 128))
    while TM > 128 and _round_up(rows, TM) // TM < 2:
        TM = max(128, _round_up(TM // 2, 128))
    rows_p = _round_up(rows, TM)
    num_tiles = rows_p // TM

    Kp = _round_up(K, 128)

    # Transposed + bf16 + zero-padded along K and rows only (Cout left unpadded,
    # so every output store is lane-dense and carries no wasted HBM bytes).
    x_t = jnp.pad(im2col.astype(compute_dtype).T,
                  ((0, Kp - K), (0, rows_p - rows)))                          # (Kp, rows_p)
    w_t = jnp.pad(w_t, ((0, 0), (0, Kp - K))).astype(compute_dtype)           # (Cout, Kp)

    out_t = pl.pallas_call(
        conv_bn_relu_kernel,
        out_shape=jax.ShapeDtypeStruct((Cout, rows_p), x_ncdhw.dtype),
        grid=(num_tiles,),
        in_specs=[
            pl.BlockSpec((Kp, TM), lambda i: (0, i)),
            pl.BlockSpec((Cout, Kp), lambda i: (0, 0)),
            pl.BlockSpec((Cout, 1), lambda i: (0, 0)),
        ],
        out_specs=pl.BlockSpec((Cout, TM), lambda i: (0, i)),
        compiler_params=pltpu.CompilerParams(
            dimension_semantics=("parallel",),
        ),
    )(x_t, w_t, bias)

    # strip row padding, back to PyTorch NCDHW
    out = out_t[:, :rows].reshape(Cout, N, Do, Ho, Wo)
    return jnp.transpose(out, (1, 0, 2, 3, 4))


def reference(x_ncdhw, weight_oidhw, gamma, beta, running_mean, running_var,
              *, stride=1, padding=1, eps=1e-3):
    y = jax.lax.conv_general_dilated(
        x_ncdhw, weight_oidhw,
        window_strides=(stride, stride, stride),
        padding=[(padding, padding)] * 3,
        dimension_numbers=("NCDHW", "OIDHW", "NCDHW"))
    scale = (gamma / jnp.sqrt(running_var + eps)).reshape(1, -1, 1, 1, 1)
    bias = (beta - running_mean * gamma / jnp.sqrt(running_var + eps)).reshape(1, -1, 1, 1, 1)
    return jnp.maximum(y * scale + bias, 0.0)


if __name__ == "__main__":
    key = jax.random.PRNGKey(0)
    k_x, k_w, k_g, k_b, k_m, k_v = jax.random.split(key, 6)

    N, Cin, Cout = 2, 4, 8
    D = H = W = 8
    kD = kH = kW = 3

    x = jax.random.normal(k_x, (N, Cin, D, H, W), jnp.float32)
    weight = jax.random.normal(k_w, (Cout, Cin, kD, kH, kW), jnp.float32) * 0.1
    gamma = 1.0 + 0.1 * jax.random.normal(k_g, (Cout,), jnp.float32)
    beta = 0.1 * jax.random.normal(k_b, (Cout,), jnp.float32)
    running_mean = 0.1 * jax.random.normal(k_m, (Cout,), jnp.float32)
    running_var = 1.0 + 0.1 * jax.random.uniform(k_v, (Cout,), jnp.float32)

    out = basic_conv3d(x, weight, gamma, beta, running_mean, running_var)
    out = jax.block_until_ready(out)

    ref = reference(x, weight, gamma, beta, running_mean, running_var)
    assert out.shape == (N, Cout, D, H, W), out.shape
    # bf16 matmul operands -> tolerance loosened accordingly (f32 accumulation).
    assert jnp.allclose(out, ref, atol=5e-2, rtol=5e-2), "mismatch vs JAX reference"

    print("KERNEL_OK")
</pallas_src>

<mosaic_0001>
module attributes {stable_mosaic.version = 11 : i64} {
  func.func @conv_bn_relu_kernel(%arg0: i32, %arg1: memref<128x512xbf16, #tpu.memory_space<vmem>>, %arg2: memref<8x128xbf16, #tpu.memory_space<vmem>>, %arg3: memref<8x1xf32, #tpu.memory_space<vmem>>, %arg4: memref<8x512xf32, #tpu.memory_space<vmem>>) attributes {dimension_semantics = [#tpu.dimension_semantics<parallel>], iteration_bounds = array<i64: 2>, scalar_prefetch = 0 : i64, scratch_operands = 0 : i64, tpu.core_type = #tpu.core_type<tc>, window_params = [{transform_indices = @transform_0, window_bounds = array<i64: 128, 512>}, {pipeline_mode = #tpu.pipeline_mode<synchronous>, transform_indices = @transform_1, window_bounds = array<i64: 8, 128>}, {pipeline_mode = #tpu.pipeline_mode<synchronous>, transform_indices = @transform_2, window_bounds = array<i64: 8, 1>}, {transform_indices = @transform_3, window_bounds = array<i64: 8, 512>}]} {
    %c0 = arith.constant 0 : index
    %c0_0 = arith.constant 0 : index
    %0 = vector.load %arg2[%c0, %c0_0] : memref<8x128xbf16, #tpu.memory_space<vmem>>, vector<8x128xbf16>
    %c0_1 = arith.constant 0 : index
    %c0_2 = arith.constant 0 : index
    %1 = vector.load %arg1[%c0_1, %c0_2] : memref<128x512xbf16, #tpu.memory_space<vmem>>, vector<128x512xbf16>
    %cst = arith.constant dense<0.000000e+00> : vector<8x512xf32>
    %2 = tpu.matmul %0, %1, %cst {dimension_numbers = #tpu.dot_dimension_numbers<[1], [0], [0], [1], [0, 0, 1, 1], [], []>} : vector<8x128xbf16>, vector<128x512xbf16>, vector<8x512xf32> -> vector<8x512xf32>
    %c0_3 = arith.constant 0 : index
    %c0_4 = arith.constant 0 : index
    %3 = vector.load %arg3[%c0_3, %c0_4] : memref<8x1xf32, #tpu.memory_space<vmem>>, vector<8x1xf32>
    %4 = vector.broadcast %3 : vector<8x1xf32> to vector<8x512xf32>
    %5 = arith.addf %2, %4 : vector<8x512xf32>
    %cst_5 = arith.constant 0.000000e+00 : f32
    %6 = vector.broadcast %cst_5 : f32 to vector<8x512xf32>
    %7 = arith.maximumf %5, %6 : vector<8x512xf32>
    %c0_6 = arith.constant 0 : index
    %c0_7 = arith.constant 0 : index
    %8 = vector.load %arg4[%c0_6, %c0_7] : memref<8x512xf32, #tpu.memory_space<vmem>>, vector<8x512xf32>
    tpu.vector_store %arg4[%c0_6, %c0_7], %7 {strides = array<i32>} : memref<8x512xf32, #tpu.memory_space<vmem>>, vector<8x512xf32>,
    return
  }
  func.func @transform_0(%arg0: i32) -> (i32, i32) {
    %c0_i32 = arith.constant 0 : i32
    %c0_i32_0 = arith.constant 0 : i32
    return %c0_i32, %arg0 : i32, i32
  }
  func.func @transform_1(%arg0: i32) -> (i32, i32) {
    %c0_i32 = arith.constant 0 : i32
    %c0_i32_0 = arith.constant 0 : i32
    %c0_i32_1 = arith.constant 0 : i32
    return %c0_i32, %c0_i32_0 : i32, i32
  }
  func.func @transform_2(%arg0: i32) -> (i32, i32) {
    %c0_i32 = arith.constant 0 : i32
    %c0_i32_0 = arith.constant 0 : i32
    %c0_i32_1 = arith.constant 0 : i32
    return %c0_i32, %c0_i32_0 : i32, i32
  }
  func.func @transform_3(%arg0: i32) -> (i32, i32) {
    %c0_i32 = arith.constant 0 : i32
    %c0_i32_0 = arith.constant 0 : i32
    return %c0_i32, %arg0 : i32, i32
  }
}

</mosaic_0001>

<bundles_post_ra>
// kernel: tpu_custom_call.1
= control target key start
LH: loop header
LB: loop body
LE: loop exit
PB: predicated region body
PF: predicated region fallthrough
CT: control target
= control target key end

     0   :  { %8 = vsyncpa [#allocation3], 0  ;;  %s1040_s0 = inlined_call_operand.hbm [shape: bf16[128,1024], index: 0, kind: input, shape index: {}]   ;;  %s1041_s1 = inlined_call_operand.vmem [shape: bf16[8,128], index: 1, kind: input, shape index: {}]   ;;  %s1042_s2 = inlined_call_operand.vmem [shape: f32[8,1], index: 2, kind: input, shape index: {}]   ;;  %s1043_s3 = inlined_call_operand.hbm [shape: f32[8,1024], index: 3, kind: output, shape index: {}]  }
   0x1   :  { %10 = vsyncpa [#allocation3 + $0x1], 0 }
   0x2   :  { %11 = vsyncpa [#allocation4], 0 }
   0x3   :  { %13 = vsyncpa [#allocation4 + $0x1], 0  ;;  %s837_s12 = smov 0   ;;  %s839_s13 = smov 0  }
   0x4   :  { %s841_s14 = smov 0   ;;  %s843_s15 = smov 0  }
   0x5 LB: > { %s858_s16 = sadd.s32 4294967295, %s809_s15   ;;  %s566_s17 = sadd.s32 4294967294, %s809_s15   ;;  %s809_s15 = sphi %s843_s15, %s1057_s15   ;;  %s805_s14 = sphi %s841_s14, %s1056_s14   ;;  %s801_s13 = sphi %s839_s13, %s1055_s13   ;;  %s797_s12 = sphi %s837_s12, %s1054_s12  }
   0x6   : > { %s862_s18 = sadd.s32 1, %s809_s15   ;;  %s26_s19 = sadd.s32 1, %s805_s14 }
   0x7   : > { %s23_s20 = ssub.s32 %s809_s15, %s862_s18  ;;  %p33_p0 = scmp.ne.s32.totalorder %s805_s14, %s801_s13 }
   0x8   : > { %p24_p1 = scmp.eq.s32.totalorder %s23_s20, 0  ;;  %p34_p2 = scmp.eq.s32.totalorder %s809_s15, 0 }
   0x9   : > { %p39_p3 = scmp.ne.s32.totalorder %s801_s13, %s797_s12  ;;  %p40_p4 = scmp.eq.s32.totalorder %s858_s16, 0 }
   0xa   : > { %s874_s21 = scalar_select %p24_p1, %s805_s14, %s26_s19  }
   0xb   : > { %p876_p5 = por %p34_p2, %p33_p0  ;;  %p880_p6 = por %p40_p4, %p39_p3 }
   0xc   : > { %p105_p7 = scmp.eq.s32.totalorder %s858_s16, 1  ;;  %p111_p8 = scmp.eq.s32.totalorder %s566_s17, 1 }
   0xd   : > { %p626_p10 = scmp.lt.s32.totalorder %s809_s15, 2  ;;  %s137_s26 = sand.u32 1, %s805_s14  }
   0xe   : > { %p887_p11 = por %p105_p7, %p33_p0  ;;  %p891_p12 = por %p111_p8, %p39_p3 }
   0xf   : > { %s612_s27 = sshll.u32 %s809_s15, 8  ;;  %s569_s28 = sshll.u32 %s137_s26, 8 }
  0x10   : > { %s1047_s24 = scalar_select %p887_p11, 1, 0 }
  0x11   : > { %s1048_s25 = scalar_select %p891_p12, 1, 0 }
  0x12   : > { %s900_s4 = scalar_lea.hbm %s1040_s0, %s612_s27  ;;  %s141_s5 = scalar_lea.vmem [#allocation2], %s569_s28 }
  0x13   : > { %s148_s6 = sshll.u32 %s141_s5, 4  ;;  %p904_p13 = pnand %p626_p10, %p876_p5  ;;  %s908_s6 = int_to_ptr.vmem [resolvable:$true] %s148_s6 }
  0x14   : > { %s911_s8 = scalar_lea.sflag [#allocation3], %s137_s26  ;;  %s713_s9 = scalar_lea.hbm %s900_s4, 4096 }
  0x15   : > { %p714_p1 = scmp.ne.s32.totalorder %s900_s4, %s713_s9  ;;  %p715_p2 = pneg %p904_p13 }
  0x16   : > { %s718_s17 = scalar_lea.hbm %s1040_s0, 8192  ;;  %p719_p5 = scmp.lt.u32.totalorder %s900_s4, %s1040_s0 }
  0x17   : > { %p716_p3 = pnand %p715_p2, %p714_p1  ;;  %p720_p7 = scmp.lt.u32.totalorder %s718_s17, %s713_s9 }
  0x18   : > { %p722_p10 = scmp.lt.u32.totalorder %s713_s9, %s900_s4 }
  0x19   : > { %p717_p4 = pneg %p716_p3  ;;  %p721_p8 = por %p720_p7, %p719_p5 }
  0x1b   : > { %p723_p9 = por %p722_p10, %p721_p8 }
  0x1d   : > { %p724_p0 = pnand %p723_p9, %p717_p4 }
  0x1f   : > { %727 = shalt.err (!%p724_p0)
}
  0x20   : > { %s728_s22 = scalar_lea.vmem %s908_s6, 4096  ;;  %s811_s26 = smov [#allocation2]  }
  0x21   : > { %p729_p1 = scmp.ne.s32.totalorder %s908_s6, %s728_s22  ;;  %s733_s27 = sshll.u32 %s811_s26, 4  ;;  %s734_s27 = int_to_ptr.vmem [resolvable:$false] %s733_s27 }
  0x22   : > { %s735_s28 = scalar_lea.vmem %s734_s27, 8192  ;;  %p736_p11 = scmp.lt.s32.totalorder %s908_s6, %s734_s27 }
  0x23   : > { %p731_p3 = pnand %p729_p1, %p715_p2  ;;  %p737_p5 = scmp.lt.s32.totalorder %s735_s28, %s728_s22 }
  0x25   : > { %p732_p12 = pneg %p731_p3  ;;  %p738_p7 = por %p737_p5, %p736_p11 }
  0x27   : > { %p739_p8 = pnand %p738_p7, %p732_p12 }
  0x29   : > { %742 = shalt.err (!%p739_p8)
}
  0x2a   : > { %s812_s29 = smov 512   ;;  %s813_s30 = smov 256  }
  0x2b   : > { %s814_s5 = smov 16   ;;  %p156_p9 = scmp.lt.s32.totalorder %s809_s15, 3 }
  0x2c   : > { %621 = dma.hbm_to_vmem [thread:$0]  (!%p904_p13), %s900_s4, 4096, %s908_s6, %s911_s8, %s812_s29, %s813_s30, %s814_s5  }
  0x2d   : > { %p1050_p0 = scmp.ge.s32.totalorder %s809_s15, 1 }
  0x2f   : > { %p157_p2 = pnand %p1050_p0, %p156_p9 }
  0x30   : > { %s943_s9 = sand.u32 (!%p157_p2), 1, %s801_s13  }
  0x31   : > { %160 = sbr.rel (%p157_p2) target bundleno = 323 (0x143), region = 32  ;;  %s573_s10 = sshll.u32 (!%p157_p2), %s943_s9, 8 }
  0x32   : > { %s163_s11 = scalar_lea.sflag (!%p157_p2), [#allocation3], %s943_s9  ;;  %s947_s17 = scalar_lea.vmem (!%p157_p2), [#allocation2], %s573_s10 }
  0x38   : > { %788 = dma.done.wait (%p880_p6), %s163_s11, 4096  }
  0x39   : > { %790 = vsyncadd (%p880_p6), %s163_s11, 4294963200  ;;  %v815_v0 = vmov 0   ;;  %v665_v1 = vld [vmem:[%s947_s17 + $0x4] ss:$16 sps:$4 sm:$0xff]   ;;  %v667_v2 = vld [vmem:[%s947_s17 + $0xc] ss:$16 sps:$4 sm:$0xff]  }
  0x3a   : > { %423 = vmatprep.mubr.bf16.mxu0 %v815_v0  ;;  %464 = vmatprep.mubr.bf16.mxu1 %v815_v0  ;;  %v669_v3 = vld [vmem:[%s947_s17] ss:$16 sps:$4 sm:$0xff]   ;;  %v670_v4 = vld [vmem:[%s947_s17 + $0x8] ss:$16 sps:$4 sm:$0xff]   ;;  %v671_v5 = vld [vmem:[%s947_s17 + $0x24] ss:$16 sps:$4 sm:$0xff]  }
  0x3b   : > { %664 = vset.pattern.permute.xlu0 %v815_v0  ;;  %391 = vmatprep.subr.bf16.mxu0 %v665_v1  ;;  %v673_v6 = vld [vmem:[%s947_s17 + $0x2c] ss:$16 sps:$4 sm:$0xff]   ;;  %v675_v7 = vld [vmem:[%s947_s17 + $0x20] ss:$16 sps:$4 sm:$0xff]   ;;  %v676_v8 = vld [vmem:[%s947_s17 + $0x28] ss:$16 sps:$4 sm:$0xff]  }
  0x3c   : > { %432 = vmatprep.subr.bf16.mxu1 %v667_v2  ;;  %392 = vmatpush1.bf16.msra.mxu0 %v669_v3  ;;  %v677_v9 = vld [vmem:[%s947_s17 + $0x44] ss:$16 sps:$4 sm:$0xff]   ;;  %v679_v10 = vld [vmem:[%s947_s17 + $0x4c] ss:$16 sps:$4 sm:$0xff]   ;;  %v681_v11 = vld [vmem:[%s947_s17 + $0x40] ss:$16 sps:$4 sm:$0xff]  }
  0x3d   : > { %433 = vmatpush1.bf16.msra.mxu1 %v670_v4  ;;  %393 = vmatprep.subr.bf16.mxu0 %v671_v5  ;;  %v682_v12 = vld [vmem:[%s947_s17 + $0x48] ss:$16 sps:$4 sm:$0xff]   ;;  %v683_v13 = vld [vmem:[%s947_s17 + $0x64] ss:$16 sps:$4 sm:$0xff]   ;;  %v685_v14 = vld [vmem:[%s947_s17 + $0x6c] ss:$16 sps:$4 sm:$0xff]  }
  0x3e   : > { %434 = vmatprep.subr.bf16.mxu1 %v673_v6  ;;  %v687_v15 = vld [vmem:[%s947_s17 + $0x60] ss:$16 sps:$4 sm:$0xff]   ;;  %v688_v16 = vld [vmem:[%s947_s17 + $0x68] ss:$16 sps:$4 sm:$0xff]   ;;  %v689_v17 = vld [vmem:[%s947_s17 + $0x84] ss:$16 sps:$4 sm:$0xff]  }
  0x3f   : > { %v691_v18 = vld [vmem:[%s947_s17 + $0x8c] ss:$16 sps:$4 sm:$0xff]   ;;  %v693_v19 = vld [vmem:[%s947_s17 + $0x80] ss:$16 sps:$4 sm:$0xff]   ;;  %v694_v20 = vld [vmem:[%s947_s17 + $0x88] ss:$16 sps:$4 sm:$0xff]  }
  0x40   : > { %394 = vmatpush1.bf16.msra.mxu0 %v675_v7  ;;  %v695_v21 = vld [vmem:[%s947_s17 + $0xa4] ss:$16 sps:$4 sm:$0xff]   ;;  %v697_v22 = vld [vmem:[%s947_s17 + $0xac] ss:$16 sps:$4 sm:$0xff]   ;;  %v699_v23 = vld [vmem:[%s947_s17 + $0xa0] ss:$16 sps:$4 sm:$0xff]  }
  0x41   : > { %435 = vmatpush1.bf16.msra.mxu1 %v676_v8  ;;  %395 = vmatprep.subr.bf16.mxu0 %v677_v9  ;;  %v700_v24 = vld [vmem:[%s947_s17 + $0xa8] ss:$16 sps:$4 sm:$0xff]   ;;  %v701_v25 = vld [vmem:[%s947_s17 + $0xc4] ss:$16 sps:$4 sm:$0xff]   ;;  %v703_v26 = vld [vmem:[%s947_s17 + $0xcc] ss:$16 sps:$4 sm:$0xff]  }
  0x42   : > { %436 = vmatprep.subr.bf16.mxu1 %v679_v10  ;;  %v225_v27 = vld [vmem:[%s1042_s2] sm:$0xff]  ;;  %v706_v29 = vld [vmem:[%s947_s17 + $0xc8] ss:$16 sps:$4 sm:$0xff]   ;;  %v709_v31 = vld [vmem:[%s947_s17 + $0xec] ss:$16 sps:$4 sm:$0xff]   ;;  %s574_s8 = sshll.u32 %s943_s9, 5 }
  0x43   : > { %228 = vperm.xlu0 %664, %v225_v27   ;;  %v705_v28 = vld [vmem:[%s947_s17 + $0xc0] ss:$16 sps:$4 sm:$0xff]   ;;  %v707_v30 = vld [vmem:[%s947_s17 + $0xe4] ss:$16 sps:$4 sm:$0xff]   ;;  %v712_v33 = vld [vmem:[%s947_s17 + $0xe8] ss:$16 sps:$4 sm:$0xff]  }
  0x44   : > { %396 = vmatpush1.bf16.msra.mxu0 %v681_v11  ;;  %v711_v32 = vld [vmem:[%s947_s17 + $0xe0] ss:$16 sps:$4 sm:$0xff]   ;;  %s613_s19 = sshll.u32 %s858_s16, 9  ;;  %s188_s20 = scalar_lea.vmem [#allocation5], %s574_s8 }
  0x45   : > { %437 = vmatpush1.bf16.msra.mxu1 %v682_v12  ;;  %397 = vmatprep.subr.bf16.mxu0 %v683_v13  ;;  %v192_v34 = vld [vmem:[%s1041_s1] sm:$0xf]  ;;  %s496_s22 = sshll.u32 %s188_s20, 4  ;;  %s996_s28 = scalar_lea.hbm %s1043_s3, %s613_s19  ;;  %s998_s22 = int_to_ptr.vmem [resolvable:$true] %s496_s22 }
  0x46   : > { %438 = vmatprep.subr.bf16.mxu1 %v685_v14  ;;  %s482_s16 = scalar_lea.sflag [#allocation4], %s943_s9  ;;  %s743_s29 = scalar_lea.vmem %s998_s22, 512 }
  0x47   : > { %p744_p6 = scmp.ne.s32.totalorder %s998_s22, %s743_s29  ;;  %p1051_p11 = scmp.ne.s32.totalorder %s1047_s24, 0 }
  0x48   : > { %398 = vmatpush1.bf16.msra.mxu0 %v687_v15  ;;  %s816_s30 = smov [#allocation5]  }
  0x49   : > { %439 = vmatpush1.bf16.msra.mxu1 %v688_v16  ;;  %399 = vmatprep.subr.bf16.mxu0 %v689_v17  ;;  %p745_p12 = pnand %p744_p6, %p1051_p11  ;;  %s747_s5 = sshll.u32 %s816_s30, 4  ;;  %s748_s5 = int_to_ptr.vmem [resolvable:$false] %s747_s5 }
  0x4a   : > { %440 = vmatprep.subr.bf16.mxu1 %v691_v18  ;;  %s749_s10 = scalar_lea.vmem %s748_s5, 1024  ;;  %p750_p4 = scmp.lt.s32.totalorder %s998_s22, %s748_s5 }
  0x4b   : > { %p746_p13 = pneg %p745_p12  ;;  %p751_p10 = scmp.lt.s32.totalorder %s749_s10, %s743_s29 }
  0x4c   : > { %400 = vmatpush1.bf16.msra.mxu0 %v693_v19 }
  0x4d   : > { %441 = vmatpush1.bf16.msra.mxu1 %v694_v20  ;;  %401 = vmatprep.subr.bf16.mxu0 %v695_v21  ;;  %p752_p1 = por %p751_p10, %p750_p4 }
  0x4e   : > { %442 = vmatprep.subr.bf16.mxu1 %v697_v22 }
  0x4f   : > { %p753_p3 = pnand %p752_p1, %p746_p13 }
  0x50   : > { %402 = vmatpush1.bf16.msra.mxu0 %v699_v23 }
  0x51   : > { %443 = vmatpush1.bf16.msra.mxu1 %v700_v24  ;;  %403 = vmatprep.subr.bf16.mxu0 %v701_v25 }
  0x52   : > { %444 = vmatprep.subr.bf16.mxu1 %v703_v26 }
  0x54   : > { %404 = vmatpush1.bf16.msra.mxu0 %v705_v28 }
  0x55   : > { %445 = vmatpush1.bf16.msra.mxu1 %v706_v29  ;;  %405 = vmatprep.subr.bf16.mxu0 %v707_v30 }
  0x56   : > { %446 = vmatprep.subr.bf16.mxu1 %v709_v31 }
  0x58   : > { %406 = vmatpush1.bf16.msra.mxu0 %v711_v32 }
  0x59   : > { %447 = vmatpush1.bf16.msra.mxu1 %v712_v33 }
  0x5b   : > { %424 = vmatmul.mubr.bf16.vlgmr.msra.gmra.mrb[0].mxu0 %v192_v34 }
  0x5c   : > { %465 = vmatmul.mubr.bf16.vlgmr.msra.gmra.mrb[0].mxu1 %v192_v34 }
  0xc2   : > { %v229_v35 = vpop.permute.xlu0 %228 }
 0x12e   : > { %v425_v36 = vpop.f32.mrb[0].mxu0 }
 0x12f   : > { %v466_v37 = vpop.f32.mrb[0].mxu1  ;;  %v426_v38 = vadd.f32 %v425_v36, %v229_v35  ;;  %v427_v40 = vpop.f32.mrb[1].mxu0 }
 0x130   : > { %v467_v39 = vadd.f32 %v466_v37, %v229_v35  ;;  %v468_v41 = vpop.f32.mrb[1].mxu1  ;;  %v428_v42 = vadd.f32 %v427_v40, %v229_v35  ;;  %v429_v44 = vpop.f32.mrb[2].mxu0 }
 0x131   : > { %v469_v43 = vadd.f32 %v468_v41, %v229_v35  ;;  %v470_v45 = vpop.f32.mrb[2].mxu1  ;;  %v473_v46 = vmax.f32 %v426_v38, 0.0  ;;  %v430_v48 = vpop.f32.mrb[3].mxu0 }
 0x132   : > { %v475_v47 = vmax.f32 %v467_v39, 0.0  ;;  %v471_v49 = vpop.f32.mrb[3].mxu1  ;;  %v474_v50 = vmax.f32 %v428_v42, 0.0 }
 0x133   : > { %v476_v51 = vmax.f32 %v469_v43, 0.0  ;;  %477 = vst [vmem:[%s188_s20] sm:$0xff] %v473_v46 }
 0x134   : > { %479 = vst [vmem:[%s188_s20 + $0x10] sm:$0xff] %v475_v47  ;;  %478 = vst [vmem:[%s188_s20 + $0x8] sm:$0xff] %v474_v50 }
 0x135   : > { %480 = vst [vmem:[%s188_s20 + $0x18] sm:$0xff] %v476_v51 }
 0x136   : > { %756 = shalt.err (!%p753_p3)
}
 0x137   : > { %s757_s9 = scalar_lea.hbm %s996_s28, 512  ;;  %s761_s23 = scalar_lea.hbm %s1043_s3, 1024 }
 0x138   : > { %p758_p5 = scmp.ne.s32.totalorder %s996_s28, %s757_s9  ;;  %p762_p9 = scmp.lt.u32.totalorder %s996_s28, %s1043_s3 }
 0x139   : > { %p763_p0 = scmp.lt.u32.totalorder %s761_s23, %s757_s9  ;;  %p765_p6 = scmp.lt.u32.totalorder %s757_s9, %s996_s28 }
 0x13a   : > { %p759_p7 = pnand %p758_p5, %p1051_p11 }
 0x13b   : > { %p764_p2 = por %p763_p0, %p762_p9 }
 0x13c   : > { %p760_p8 = pneg %p759_p7 }
 0x13d   : > { %p766_p12 = por %p765_p6, %p764_p2 }
 0x13f   : > { %p767_p13 = pnand %p766_p12, %p760_p8 }
 0x141   : > { %770 = shalt.err (!%p767_p13)
}
 0x142   : > { %616 = dma.vmem_to_hbm [thread:$0]  (%p1051_p11), %s998_s22, 512, %s996_s28, %s482_s16  }
 0x143 PF: > { %s508_s7 = sand.u32 1, %s797_s12   ;;  %p1052_p4 = scmp.ne.s32.totalorder %s1048_s25, 0 }
 0x144   : > { %p1053_p10 = scmp.ge.s32.totalorder %s809_s15, 2  ;;  %s509_s8 = scalar_lea.sflag [#allocation4], %s508_s7 }
 0x146   : > { %p623_p1 = pnand %p1053_p10, %p1052_p4 }
 0x148   : > { %792 = dma.done.wait (!%p623_p1), %s509_s8, 512  }
 0x149   : > { %794 = vsyncadd (!%p623_p1), %s509_s8, 4294966784  ;;  %p16_p3 = scmp.ge.s32.totalorder %s862_s18, 4   ;;  %s1054_s12 = smov %s801_s13 }
 0x14a   : > { %s1055_s13 = smov %s805_s14  ;;  %s1056_s14 = smov %s874_s21 }
 0x14b   : > { %s1057_s15 = smov %s862_s18  ;;  %18 = sbr.rel (!%p16_p3) target bundleno = 5 (0x5), region = 77 }
 0x152   :  { %514 = vsyncpa [#allocation3], 1 }
 0x153   :  { %516 = vsyncpa [#allocation3 + $0x1], 1 }
 0x154   :  { %517 = vsyncpa [#allocation4], 1 }
 0x155   :  { %519 = vsyncpa [#allocation4 + $0x1], 1 }

</bundles_post_ra>
